<compile_context>
chip_gen: v5e
topology: v5e:2x2
jax: 0.10.0
libtpu: 0.0.40
codegen_flags: <defaults>
</compile_context>

<pallas_src>
import jax
import jax.numpy as jnp
from jax.experimental import pallas as pl
from jax.experimental.pallas import tpu as pltpu

_LANE = 128
_SUBLANE = 8


def _round_up(x, m):
    return (x + m - 1) // m * m


def _pad2d(a, rows, cols, dtype):
    out = jnp.zeros((rows, cols), dtype)
    return out.at[: a.shape[0], : a.shape[1]].set(a.astype(dtype))


def _clamp_tile(cfg, limit):
    """Largest power-of-two multiple of 128 that is <= min(cfg, limit)."""
    t = _LANE
    cap = min(cfg, limit)
    while t * 2 <= cap:
        t *= 2
    return t


def _choose_tiles(n, tm_cfg, tk_cfg):
    n128 = _round_up(max(n, 1), _LANE)
    tm = _clamp_tile(tm_cfg, n128)
    tk = _clamp_tile(tk_cfg, n128)
    n_pad = _round_up(max(n, 1), max(tm, tk))
    # v7x megacore: keep >= 2 row tiles so the "parallel" axis shards over 2 TCs.
    if n_pad // tm < 2 and tm > _LANE:
        tm //= 2
    return tm, tk, n_pad


def _largest_div_tile(n_pad, cap):
    t = _LANE
    while t * 2 <= cap and n_pad % (t * 2) == 0:
        t *= 2
    return t


def _vmem_limit_bytes():
    """Generation-aware scoped-VMEM budget: ~half of physical, clamped."""
    phys = None
    try:
        info = pltpu.get_tpu_info()
        phys = getattr(info, "vmem_capacity_bytes", None) or getattr(info, "vmem_bytes", None)
    except Exception:
        phys = None
    if phys:
        return int(min(96 << 20, max(32 << 20, int(phys) // 2)))
    return 32 << 20  # conservative fallback (safe on every generation)


# ----------------------------------------------------------------------------
# Kernel 1: one GIN conv layer
#   grid = (node row tiles [parallel], node reduction tiles [arbitrary])
#   out[i] = relu( MLP( (A_hat @ h)[i] ) )   with A_hat = A + I (eps = 0)
# ----------------------------------------------------------------------------
def _make_conv_kernel(resident_h, tk):
    def kernel(a_ref, h_ref, w1_ref, b1_ref, w2_ref, b2_ref, w3_ref, b3_ref,
               out_ref, acc_ref):
        k = pl.program_id(1)

        @pl.when(k == 0)
        def _():
            acc_ref[...] = jnp.zeros_like(acc_ref)

        if resident_h:
            # h is VMEM-resident: slice the reduction tile in-kernel (no re-DMA).
            h_tile = h_ref[pl.ds(pl.multiple_of(k * tk, tk), tk), :]
        else:
            h_tile = h_ref[...]

        # (A + I) @ h, tile-accumulated on the MXU (bf16 inputs, f32 accumulate).
        acc_ref[...] += jnp.dot(a_ref[...], h_tile,
                                preferred_element_type=jnp.float32)

        @pl.when(k == pl.num_programs(1) - 1)
        def _():
            def linear(z, w_ref, b_ref):
                return jnp.dot(z.astype(jnp.bfloat16), w_ref[...],
                               preferred_element_type=jnp.float32) + b_ref[...]

            z = acc_ref[...]                                     # f32
            z = jnp.maximum(linear(z, w1_ref, b1_ref), 0.0)
            z = jnp.maximum(linear(z, w2_ref, b2_ref), 0.0)
            z = linear(z, w3_ref, b3_ref)
            out_ref[...] = jnp.maximum(z, 0.0).astype(out_ref.dtype)  # post-conv relu

    return kernel


def _conv_vmem_bytes(tm, tk, n_pad, h_in, h_out, resident_h, a_bufs):
    b = a_bufs * tm * tk * 2                                  # A_hat tiles (bf16)
    b += (2 * n_pad * h_in * 2) if resident_h else (2 * tk * h_in * 2)   # h (bf16)
    b += 2 * tm * h_out * 2                                   # output tiles (bf16)
    b += tm * h_in * 4                                        # f32 accumulator
    b += 2 * 2 * (h_in * h_out + 2 * h_out * h_out)           # weights (bf16, 2 bufs)
    b += 2 * 4 * 3 * h_out                                    # biases (f32, 2 bufs)
    return b


def _gin_conv_layer(a_hat, h, w1, b1, w2, b2, w3, b3, *, tm, tk, vmem_limit):
    n_pad = a_hat.shape[0]
    h_in = h.shape[1]
    h_out = w1.shape[1]
    grid = (n_pad // tm, n_pad // tk)
    budget = int(0.7 * vmem_limit)

    # Deeper A_hat buffering only pays off for large streamed tiles.
    a_bufs = 3 if (tk >= 512 and hasattr(pl, "Buffered")) else 2
    resident_h = _conv_vmem_bytes(tm, tk, n_pad, h_in, h_out, True, a_bufs) <= budget
    if (not resident_h and a_bufs == 3
            and _conv_vmem_bytes(tm, tk, n_pad, h_in, h_out, False, 3) > budget):
        a_bufs = 2

    a_kwargs = {"pipeline_mode": pl.Buffered(3)} if a_bufs == 3 else {}
    a_spec = pl.BlockSpec((tm, tk), lambda i, k: (i, k), **a_kwargs)
    if resident_h:
        h_spec = pl.BlockSpec((n_pad, h_in), lambda i, k: (0, 0))   # VMEM-resident
    else:
        h_spec = pl.BlockSpec((tk, h_in), lambda i, k: (k, 0))      # streamed

    full = lambda i, k: (0, 0)

    flops = 2 * n_pad * n_pad * h_in + 2 * n_pad * (h_in * h_out + 2 * h_out * h_out)
    h_reads = n_pad if resident_h else grid[0] * n_pad
    bytes_accessed = (2 * n_pad * n_pad                          # A_hat (bf16)
                      + 2 * h_reads * h_in                       # h (bf16)
                      + 2 * n_pad * h_out                        # out (bf16)
                      + 2 * (h_in * h_out + 2 * h_out * h_out)   # weights (bf16)
                      + 4 * 3 * h_out)                           # biases (f32)

    return pl.pallas_call(
        _make_conv_kernel(resident_h, tk),
        out_shape=jax.ShapeDtypeStruct((n_pad, h_out), jnp.bfloat16),
        grid_spec=pltpu.PrefetchScalarGridSpec(
            num_scalar_prefetch=0,
            grid=grid,
            in_specs=[
                a_spec,                                   # A_hat tile
                h_spec,                                   # h (resident or streamed)
                pl.BlockSpec((h_in, h_out), full),        # w1 (resident)
                pl.BlockSpec((1, h_out), full),           # b1
                pl.BlockSpec((h_out, h_out), full),       # w2
                pl.BlockSpec((1, h_out), full),           # b2
                pl.BlockSpec((h_out, h_out), full),       # w3
                pl.BlockSpec((1, h_out), full),           # b3
            ],
            out_specs=pl.BlockSpec((tm, h_out), lambda i, k: (i, 0)),
            scratch_shapes=[pltpu.VMEM((tm, h_in), jnp.float32)],
        ),
        compiler_params=pltpu.CompilerParams(
            dimension_semantics=("parallel", "arbitrary"),
            vmem_limit_bytes=int(vmem_limit),
        ),
        cost_estimate=pl.CostEstimate(flops=int(flops), transcendentals=0,
                                      bytes_accessed=int(bytes_accessed)),
    )(a_hat, h, w1, b1, w2, b2, w3, b3)


# ----------------------------------------------------------------------------
# Kernel 2: global mean pool + MLP head
#   grid = (node reduction tiles,)  —  accumulate P @ h, finalize MLP head.
# ----------------------------------------------------------------------------
def _make_head_kernel(num_mlp_layers):
    def kernel(*refs):
        # refs = (pool, h, [fc_w, fc_b]*L, out_w, out_b, out_ref, acc_ref)
        acc_ref = refs[-1]
        out_ref = refs[-2]
        p_ref, h_ref = refs[0], refs[1]
        k = pl.program_id(0)

        @pl.when(k == 0)
        def _():
            acc_ref[...] = jnp.zeros_like(acc_ref)

        acc_ref[...] += jnp.dot(p_ref[...], h_ref[...],
                                preferred_element_type=jnp.float32)

        @pl.when(k == pl.num_programs(0) - 1)
        def _():
            def linear(z, w_ref, b_ref):
                return jnp.dot(z.astype(jnp.bfloat16), w_ref[...],
                               preferred_element_type=jnp.float32) + b_ref[...]

            # TODO(synk): training-mode dropout (stateful RNG masking) not
            # implemented; inference-mode dropout is identity.
            g = acc_ref[...]
            wrefs = refs[2:-2]
            for li in range(num_mlp_layers):
                g = jnp.maximum(linear(g, wrefs[2 * li], wrefs[2 * li + 1]), 0.0)
            out_ref[...] = linear(g, wrefs[-2], wrefs[-1])   # lane-dense slab

    return kernel


def _gin_head(pool, h, fc_params, ow, ob, *, tk, vmem_limit):
    b_pad, n_pad = pool.shape
    h_pad = h.shape[1]
    out_pad = ow.shape[1]
    grid = (n_pad // tk,)

    inputs = [pool, h]
    in_specs = [
        pl.BlockSpec((b_pad, tk), lambda k: (0, k)),
        pl.BlockSpec((tk, h_pad), lambda k: (k, 0)),
    ]
    flops = 2 * b_pad * n_pad * h_pad
    bytes_accessed = 2 * (b_pad * n_pad + n_pad * h_pad) + 4 * b_pad * out_pad
    for w, b in fc_params:
        inputs += [w, b]
        in_specs += [pl.BlockSpec(w.shape, lambda k: (0, 0)),
                     pl.BlockSpec(b.shape, lambda k: (0, 0))]
        flops += 2 * b_pad * w.shape[0] * w.shape[1]
        bytes_accessed += 2 * w.size + 4 * b.size
    inputs += [ow, ob]
    in_specs += [pl.BlockSpec(ow.shape, lambda k: (0, 0)),
                 pl.BlockSpec(ob.shape, lambda k: (0, 0))]
    flops += 2 * b_pad * ow.shape[0] * ow.shape[1]
    bytes_accessed += 2 * ow.size + 4 * ob.size

    return pl.pallas_call(
        _make_head_kernel(len(fc_params)),
        out_shape=jax.ShapeDtypeStruct((b_pad, out_pad), jnp.float32),
        grid_spec=pltpu.PrefetchScalarGridSpec(
            num_scalar_prefetch=0,
            grid=grid,
            in_specs=in_specs,
            out_specs=pl.BlockSpec((b_pad, out_pad), lambda k: (0, 0)),
            scratch_shapes=[pltpu.VMEM((b_pad, h_pad), jnp.float32)],
        ),
        compiler_params=pltpu.CompilerParams(
            dimension_semantics=("arbitrary",),
            vmem_limit_bytes=int(vmem_limit),
        ),
        cost_estimate=pl.CostEstimate(flops=int(flops), transcendentals=0,
                                      bytes_accessed=int(bytes_accessed)),
    )(*inputs)


# ----------------------------------------------------------------------------
# Parameter padding (done ONCE, outside the per-call forward path)
# ----------------------------------------------------------------------------
def pad_params(params):
    h_pad = _round_up(params["convs"][0][4].shape[0], _LANE)   # hidden_channels
    m_pad = _round_up(params["out"][0].shape[0], _LANE)        # MLP_neurons
    out_pad = _LANE
    convs = []
    for (w1, b1, w2, b2, w3, b3) in params["convs"]:
        in_pad = _round_up(w1.shape[0], _LANE)
        convs.append((
            _pad2d(w1, in_pad, h_pad, jnp.bfloat16), _pad2d(b1, 1, h_pad, jnp.float32),
            _pad2d(w2, h_pad, h_pad, jnp.bfloat16), _pad2d(b2, 1, h_pad, jnp.float32),
            _pad2d(w3, h_pad, h_pad, jnp.bfloat16), _pad2d(b3, 1, h_pad, jnp.float32),
        ))
    fcs = []
    fin = h_pad
    for (w, b) in params["fcs"]:
        fcs.append((_pad2d(w, fin, m_pad, jnp.bfloat16),
                    _pad2d(b, 1, m_pad, jnp.float32)))
        fin = m_pad
    ow = _pad2d(params["out"][0], m_pad, out_pad, jnp.bfloat16)
    ob = _pad2d(params["out"][1], 1, out_pad, jnp.float32)
    return {"convs": convs, "fcs": fcs, "out": (ow, ob),
            "num_classes": int(params["out"][0].shape[1])}


# ----------------------------------------------------------------------------
# Wrapper: graph preprocessing (glue), node padding, kernel calls
# ----------------------------------------------------------------------------
def gin_forward(x, edge_index, batch, padded_params, num_graphs, *,
                tm_cfg=256, tk_cfg=512, head_tk_cfg=2048):
    n, f = x.shape
    f_pad = padded_params["convs"][0][0].shape[0]
    assert f <= f_pad
    tm, tk, n_pad = _choose_tiles(n, tm_cfg, tk_cfg)
    b_pad = _round_up(max(num_graphs, _SUBLANE), _SUBLANE)
    vmem_limit = _vmem_limit_bytes()

    src, dst = edge_index[0], edge_index[1]
    # A_hat[dst, src] += 1 ; GINConv(eps=0) self-loop folded in as +I.
    # TODO(synk): for large sparse graphs replace the dense tiled A_hat@h with a
    # scalar-prefetched CSR gather / segment-sum aggregation kernel (O(E*h) work).
    a_hat = (jnp.zeros((n_pad, n_pad), jnp.float32).at[dst, src].add(1.0)
             + jnp.eye(n_pad, dtype=jnp.float32)).astype(jnp.bfloat16)

    # Mean-pool operator P (b_pad, n_pad); padded node columns are zero, so the
    # (bias-polluted) padded node rows never contribute to graph embeddings.
    onehot = jnp.zeros((b_pad, n_pad), jnp.float32).at[batch, jnp.arange(n)].set(1.0)
    counts = jnp.maximum(onehot.sum(axis=1, keepdims=True), 1.0)
    pool = (onehot / counts).astype(jnp.bfloat16)

    h = _pad2d(x, n_pad, f_pad, jnp.bfloat16)
    for (w1, b1, w2, b2, w3, b3) in padded_params["convs"]:
        h = _gin_conv_layer(a_hat, h, w1, b1, w2, b2, w3, b3,
                            tm=tm, tk=tk, vmem_limit=vmem_limit)

    head_tk = _largest_div_tile(n_pad, head_tk_cfg)
    ow, ob = padded_params["out"]
    out = _gin_head(pool, h, padded_params["fcs"], ow, ob,
                    tk=head_tk, vmem_limit=vmem_limit)
    return out[:num_graphs, :padded_params["num_classes"]]


# ----------------------------------------------------------------------------
# Deterministic parameter construction (synthetic init; shapes from __init__)
# ----------------------------------------------------------------------------
def init_params(key, num_node_features, num_conv_layers, hidden_channels,
                num_mlp_layers, mlp_neurons):
    def lin(key, fan_in, fan_out):
        kw, kb = jax.random.split(key)
        scale = 1.0 / jnp.sqrt(jnp.float32(fan_in))
        w = jax.random.uniform(kw, (fan_in, fan_out), jnp.float32, -scale, scale)
        b = jax.random.uniform(kb, (1, fan_out), jnp.float32, -scale, scale)
        return w, b

    keys = iter(jax.random.split(key, 64))
    convs = []
    for i in range(num_conv_layers):
        in_dim = num_node_features if i == 0 else hidden_channels
        w1, b1 = lin(next(keys), in_dim, hidden_channels)
        w2, b2 = lin(next(keys), hidden_channels, hidden_channels)
        w3, b3 = lin(next(keys), hidden_channels, hidden_channels)
        convs.append((w1, b1, w2, b2, w3, b3))

    fcs = []
    for i in range(num_mlp_layers):
        in_dim = hidden_channels if i == 0 else mlp_neurons
        fcs.append(lin(next(keys), in_dim, mlp_neurons))

    out = lin(next(keys), mlp_neurons, 2)
    return {"convs": convs, "fcs": fcs, "out": out}


# ----------------------------------------------------------------------------
# Pure-JAX reference (mimics the kernel's bf16 MXU inputs, f32 accumulation)
# ----------------------------------------------------------------------------
def gin_reference(x, edge_index, batch, params, num_graphs):
    def mm(a, b):
        return jnp.dot(a.astype(jnp.bfloat16), b.astype(jnp.bfloat16),
                       preferred_element_type=jnp.float32)

    n = x.shape[0]
    src, dst = edge_index[0], edge_index[1]
    a_hat = (jnp.zeros((n, n), jnp.float32).at[dst, src].add(1.0)
             + jnp.eye(n, dtype=jnp.float32))
    onehot = (batch[None, :] == jnp.arange(num_graphs)[:, None]).astype(jnp.float32)
    pool = onehot / jnp.maximum(onehot.sum(axis=1, keepdims=True), 1.0)

    h = x.astype(jnp.float32)
    for w1, b1, w2, b2, w3, b3 in params["convs"]:
        z = mm(a_hat, h)
        z = jnp.maximum(mm(z, w1) + b1, 0.0)
        z = jnp.maximum(mm(z, w2) + b2, 0.0)
        z = mm(z, w3) + b3
        h = jnp.maximum(z, 0.0)
    g = mm(pool, h)
    for w, b in params["fcs"]:
        g = jnp.maximum(mm(g, w) + b, 0.0)
    ow, ob = params["out"]
    return mm(g, ow) + ob


if __name__ == "__main__":
    # Hyperparameters (module __init__ args) at small scale.
    NUM_NODE_FEATURES = 9      # len(atom_properties_dict['C']) + 1 (synthetic)
    NUM_CONV_LAYERS = 2
    HIDDEN_CHANNELS = 32
    NUM_MLP_LAYERS = 2
    MLP_NEURONS = 32
    # dropout = 0.5  # identity at inference (training=False)

    N_NODES = 16               # 2 graphs x 8 nodes
    NUM_GRAPHS = 2

    key = jax.random.PRNGKey(0)
    kx, _ = jax.random.split(key)

    # Node features
    x = jax.random.normal(kx, (N_NODES, NUM_NODE_FEATURES), jnp.float32)

    # Bidirectional path edges inside each graph of 8 nodes.
    srcs, dsts = [], []
    for g in range(NUM_GRAPHS):
        base = g * 8
        for i in range(7):
            srcs += [base + i, base + i + 1]
            dsts += [base + i + 1, base + i]
    edge_index = jnp.array([srcs, dsts], dtype=jnp.int32)  # (2, E)

    # Graph assignment
    batch = jnp.array([0] * 8 + [1] * 8, dtype=jnp.int32)

    params = init_params(jax.random.PRNGKey(1), NUM_NODE_FEATURES,
                         NUM_CONV_LAYERS, HIDDEN_CHANNELS,
                         NUM_MLP_LAYERS, MLP_NEURONS)
    padded_params = pad_params(params)   # pad/cast weights ONCE (hoisted)

    out = gin_forward(x, edge_index, batch, padded_params, NUM_GRAPHS)
    out = jax.block_until_ready(out)

    ref = gin_reference(x, edge_index, batch, params, NUM_GRAPHS)
    assert out.shape == (NUM_GRAPHS, 2), out.shape
    assert jnp.allclose(out, ref, atol=2e-3, rtol=2e-3), (out, ref)

    print("KERNEL_OK")
</pallas_src>

<mosaic_0001>
module attributes {stable_mosaic.version = 11 : i64} {
  func.func @kernel(%arg0: i32, %arg1: i32, %arg2: memref<128x128xbf16, #tpu.memory_space<vmem>>, %arg3: memref<128x128xbf16, #tpu.memory_space<vmem>>, %arg4: memref<128x128xbf16, #tpu.memory_space<vmem>>, %arg5: memref<1x128xf32, #tpu.memory_space<vmem>>, %arg6: memref<128x128xbf16, #tpu.memory_space<vmem>>, %arg7: memref<1x128xf32, #tpu.memory_space<vmem>>, %arg8: memref<128x128xbf16, #tpu.memory_space<vmem>>, %arg9: memref<1x128xf32, #tpu.memory_space<vmem>>, %arg10: memref<128x128xbf16, #tpu.memory_space<vmem>>, %arg11: memref<128x128xf32, #tpu.memory_space<vmem>>) attributes {dimension_semantics = [#tpu.dimension_semantics<parallel>, #tpu.dimension_semantics<arbitrary>], iteration_bounds = array<i64: 1, 1>, scalar_prefetch = 0 : i64, scratch_operands = 1 : i64, tpu.core_type = #tpu.core_type<tc>, window_params = [{transform_indices = @transform_0, window_bounds = array<i64: 128, 128>}, {pipeline_mode = #tpu.pipeline_mode<synchronous>, transform_indices = @transform_1, window_bounds = array<i64: 128, 128>}, {pipeline_mode = #tpu.pipeline_mode<synchronous>, transform_indices = @transform_2, window_bounds = array<i64: 128, 128>}, {pipeline_mode = #tpu.pipeline_mode<synchronous>, transform_indices = @transform_3, window_bounds = array<i64: 1, 128>}, {pipeline_mode = #tpu.pipeline_mode<synchronous>, transform_indices = @transform_4, window_bounds = array<i64: 128, 128>}, {pipeline_mode = #tpu.pipeline_mode<synchronous>, transform_indices = @transform_5, window_bounds = array<i64: 1, 128>}, {pipeline_mode = #tpu.pipeline_mode<synchronous>, transform_indices = @transform_6, window_bounds = array<i64: 128, 128>}, {pipeline_mode = #tpu.pipeline_mode<synchronous>, transform_indices = @transform_7, window_bounds = array<i64: 1, 128>}, {transform_indices = @transform_8, window_bounds = array<i64: 128, 128>}]} {
    %c0_i32 = arith.constant 0 : i32
    %0 = arith.cmpi eq, %arg1, %c0_i32 : i32
    %1 = arith.extui %0 : i1 to i32
    %c0_i32_0 = arith.constant 0 : i32
    %2 = arith.cmpi ne, %1, %c0_i32_0 : i32
    scf.if %2 {
      %cst_9 = arith.constant 0.000000e+00 : f32
      %15 = vector.broadcast %cst_9 : f32 to vector<128x128xf32>
      %c0_10 = arith.constant 0 : index
      %c0_11 = arith.constant 0 : index
      %16 = vector.load %arg11[%c0_10, %c0_11] : memref<128x128xf32, #tpu.memory_space<vmem>>, vector<128x128xf32>
      tpu.vector_store %arg11[%c0_10, %c0_11], %15 {strides = array<i32>} : memref<128x128xf32, #tpu.memory_space<vmem>>, vector<128x128xf32>,
    } else {
    }
    %c128_i32 = arith.constant 128 : i32
    %3 = arith.muli %arg1, %c128_i32 : i32
    %4 = tpu.assume_multiple %3, 128 : i32
    %5 = arith.index_cast %4 : i32 to index
    %c0 = arith.constant 0 : index
    %6 = vector.load %arg3[%5, %c0] : memref<128x128xbf16, #tpu.memory_space<vmem>>, vector<128x128xbf16>
    %c0_1 = arith.constant 0 : index
    %c0_2 = arith.constant 0 : index
    %7 = vector.load %arg11[%c0_1, %c0_2] : memref<128x128xf32, #tpu.memory_space<vmem>>, vector<128x128xf32>
    %c0_3 = arith.constant 0 : index
    %c0_4 = arith.constant 0 : index
    %8 = vector.load %arg2[%c0_3, %c0_4] : memref<128x128xbf16, #tpu.memory_space<vmem>>, vector<128x128xbf16>
    %cst = arith.constant dense<0.000000e+00> : vector<128x128xf32>
    %9 = tpu.matmul %8, %6, %cst {dimension_numbers = #tpu.dot_dimension_numbers<[1], [0], [0], [1], [0, 0, 1, 1], [], []>} : vector<128x128xbf16>, vector<128x128xbf16>, vector<128x128xf32> -> vector<128x128xf32>
    %10 = arith.addf %7, %9 : vector<128x128xf32>
    %c0_5 = arith.constant 0 : index
    %c0_6 = arith.constant 0 : index
    %11 = vector.load %arg11[%c0_5, %c0_6] : memref<128x128xf32, #tpu.memory_space<vmem>>, vector<128x128xf32>
    tpu.vector_store %arg11[%c0_5, %c0_6], %10 {strides = array<i32>} : memref<128x128xf32, #tpu.memory_space<vmem>>, vector<128x128xf32>,
    %c0_i32_7 = arith.constant 0 : i32
    %12 = arith.cmpi eq, %arg1, %c0_i32_7 : i32
    %13 = arith.extui %12 : i1 to i32
    %c0_i32_8 = arith.constant 0 : i32
    %14 = arith.cmpi ne, %13, %c0_i32_8 : i32
    scf.if %14 {
      %c0_9 = arith.constant 0 : index
      %c0_10 = arith.constant 0 : index
      %15 = vector.load %arg11[%c0_9, %c0_10] : memref<128x128xf32, #tpu.memory_space<vmem>>, vector<128x128xf32>
      %16 = arith.truncf %15 : vector<128x128xf32> to vector<128x128xbf16>
      %c0_11 = arith.constant 0 : index
      %c0_12 = arith.constant 0 : index
      %17 = vector.load %arg4[%c0_11, %c0_12] : memref<128x128xbf16, #tpu.memory_space<vmem>>, vector<128x128xbf16>
      %cst_13 = arith.constant dense<0.000000e+00> : vector<128x128xf32>
      %18 = tpu.matmul %16, %17, %cst_13 {dimension_numbers = #tpu.dot_dimension_numbers<[1], [0], [0], [1], [0, 0, 1, 1], [], []>} : vector<128x128xbf16>, vector<128x128xbf16>, vector<128x128xf32> -> vector<128x128xf32>
      %c0_14 = arith.constant 0 : index
      %c0_15 = arith.constant 0 : index
      %19 = vector.load %arg5[%c0_14, %c0_15] : memref<1x128xf32, #tpu.memory_space<vmem>>, vector<1x128xf32>
      %20 = vector.broadcast %19 : vector<1x128xf32> to vector<128x128xf32>
      %21 = arith.addf %18, %20 : vector<128x128xf32>
      %cst_16 = arith.constant 0.000000e+00 : f32
      %22 = vector.broadcast %cst_16 : f32 to vector<128x128xf32>
      %23 = arith.maximumf %21, %22 : vector<128x128xf32>
      %24 = arith.truncf %23 : vector<128x128xf32> to vector<128x128xbf16>
      %c0_17 = arith.constant 0 : index
      %c0_18 = arith.constant 0 : index
      %25 = vector.load %arg6[%c0_17, %c0_18] : memref<128x128xbf16, #tpu.memory_space<vmem>>, vector<128x128xbf16>
      %cst_19 = arith.constant dense<0.000000e+00> : vector<128x128xf32>
      %26 = tpu.matmul %24, %25, %cst_19 {dimension_numbers = #tpu.dot_dimension_numbers<[1], [0], [0], [1], [0, 0, 1, 1], [], []>} : vector<128x128xbf16>, vector<128x128xbf16>, vector<128x128xf32> -> vector<128x128xf32>
      %c0_20 = arith.constant 0 : index
      %c0_21 = arith.constant 0 : index
      %27 = vector.load %arg7[%c0_20, %c0_21] : memref<1x128xf32, #tpu.memory_space<vmem>>, vector<1x128xf32>
      %28 = vector.broadcast %27 : vector<1x128xf32> to vector<128x128xf32>
      %29 = arith.addf %26, %28 : vector<128x128xf32>
      %cst_22 = arith.constant 0.000000e+00 : f32
      %30 = vector.broadcast %cst_22 : f32 to vector<128x128xf32>
      %31 = arith.maximumf %29, %30 : vector<128x128xf32>
      %32 = arith.truncf %31 : vector<128x128xf32> to vector<128x128xbf16>
      %c0_23 = arith.constant 0 : index
      %c0_24 = arith.constant 0 : index
      %33 = vector.load %arg8[%c0_23, %c0_24] : memref<128x128xbf16, #tpu.memory_space<vmem>>, vector<128x128xbf16>
      %cst_25 = arith.constant dense<0.000000e+00> : vector<128x128xf32>
      %34 = tpu.matmul %32, %33, %cst_25 {dimension_numbers = #tpu.dot_dimension_numbers<[1], [0], [0], [1], [0, 0, 1, 1], [], []>} : vector<128x128xbf16>, vector<128x128xbf16>, vector<128x128xf32> -> vector<128x128xf32>
      %c0_26 = arith.constant 0 : index
      %c0_27 = arith.constant 0 : index
      %35 = vector.load %arg9[%c0_26, %c0_27] : memref<1x128xf32, #tpu.memory_space<vmem>>, vector<1x128xf32>
      %36 = vector.broadcast %35 : vector<1x128xf32> to vector<128x128xf32>
      %37 = arith.addf %34, %36 : vector<128x128xf32>
      %cst_28 = arith.constant 0.000000e+00 : f32
      %38 = vector.broadcast %cst_28 : f32 to vector<128x128xf32>
      %39 = arith.maximumf %37, %38 : vector<128x128xf32>
      %40 = arith.truncf %39 : vector<128x128xf32> to vector<128x128xbf16>
      %c0_29 = arith.constant 0 : index
      %c0_30 = arith.constant 0 : index
      %41 = vector.load %arg10[%c0_29, %c0_30] : memref<128x128xbf16, #tpu.memory_space<vmem>>, vector<128x128xbf16>
      tpu.vector_store %arg10[%c0_29, %c0_30], %40 {strides = array<i32>} : memref<128x128xbf16, #tpu.memory_space<vmem>>, vector<128x128xbf16>,
    } else {
    }
    return
  }
  func.func @transform_0(%arg0: i32, %arg1: i32) -> (i32, i32) {
    %c0_i32 = arith.constant 0 : i32
    return %arg0, %arg1 : i32, i32
  }
  func.func @transform_1(%arg0: i32, %arg1: i32) -> (i32, i32) {
    %c0_i32 = arith.constant 0 : i32
    %c0_i32_0 = arith.constant 0 : i32
    %c0_i32_1 = arith.constant 0 : i32
    return %c0_i32, %c0_i32_0 : i32, i32
  }
  func.func @transform_2(%arg0: i32, %arg1: i32) -> (i32, i32) {
    %c0_i32 = arith.constant 0 : i32
    %c0_i32_0 = arith.constant 0 : i32
    %c0_i32_1 = arith.constant 0 : i32
    return %c0_i32, %c0_i32_0 : i32, i32
  }
  func.func @transform_3(%arg0: i32, %arg1: i32) -> (i32, i32) {
    %c0_i32 = arith.constant 0 : i32
    %c0_i32_0 = arith.constant 0 : i32
    %c0_i32_1 = arith.constant 0 : i32
    return %c0_i32, %c0_i32_0 : i32, i32
  }
  func.func @transform_4(%arg0: i32, %arg1: i32) -> (i32, i32) {
    %c0_i32 = arith.constant 0 : i32
    %c0_i32_0 = arith.constant 0 : i32
    %c0_i32_1 = arith.constant 0 : i32
    return %c0_i32, %c0_i32_0 : i32, i32
  }
  func.func @transform_5(%arg0: i32, %arg1: i32) -> (i32, i32) {
    %c0_i32 = arith.constant 0 : i32
    %c0_i32_0 = arith.constant 0 : i32
    %c0_i32_1 = arith.constant 0 : i32
    return %c0_i32, %c0_i32_0 : i32, i32
  }
  func.func @transform_6(%arg0: i32, %arg1: i32) -> (i32, i32) {
    %c0_i32 = arith.constant 0 : i32
    %c0_i32_0 = arith.constant 0 : i32
    %c0_i32_1 = arith.constant 0 : i32
    return %c0_i32, %c0_i32_0 : i32, i32
  }
  func.func @transform_7(%arg0: i32, %arg1: i32) -> (i32, i32) {
    %c0_i32 = arith.constant 0 : i32
    %c0_i32_0 = arith.constant 0 : i32
    %c0_i32_1 = arith.constant 0 : i32
    return %c0_i32, %c0_i32_0 : i32, i32
  }
  func.func @transform_8(%arg0: i32, %arg1: i32) -> (i32, i32) {
    %c0_i32 = arith.constant 0 : i32
    %c0_i32_0 = arith.constant 0 : i32
    return %arg0, %c0_i32 : i32, i32
  }
}

</mosaic_0001>

<bundles_post_ra>
// kernel: tpu_custom_call.1
= control target key start
LH: loop header
LB: loop body
LE: loop exit
PB: predicated region body
PF: predicated region fallthrough
CT: control target
= control target key end

     0   :  { %13 = vsyncpa [#allocation4], 0  ;;  %s1381_s0 = inlined_call_operand.hbm [shape: bf16[128,128], index: 0, kind: input, shape index: {}]   ;;  %s1382_s1 = inlined_call_operand.hbm [shape: bf16[128,128], index: 1, kind: input, shape index: {}]   ;;  %s1383_s2 = inlined_call_operand.hbm [shape: bf16[128,128], index: 2, kind: input, shape index: {}]   ;;  %s1384_s3 = inlined_call_operand.vmem [shape: f32[1,128], index: 3, kind: input, shape index: {}]   ;;  %s1385_s4 = inlined_call_operand.hbm [shape: bf16[128,128], index: 4, kind: input, shape index: {}]   ;;  %s1386_s5 = inlined_call_operand.vmem [shape: f32[1,128], index: 5, kind: input, shape index: {}]   ;;  %s1387_s6 = inlined_call_operand.hbm [shape: bf16[128,128], index: 6, kind: input, shape index: {}]   ;;  %s1388_s7 = inlined_call_operand.vmem [shape: f32[1,128], index: 7, kind: input, shape index: {}]   ;;  %s1389_s8 = inlined_call_operand.hbm [shape: bf16[128,128], index: 8, kind: output, shape index: {}]  }
   0x1   :  { %14 = vsyncpa [#allocation7], 0 }
   0x2   :  { %15 = vsyncpa [#allocation10], 0 }
   0x3   :  { %16 = vsyncpa [#allocation5], 0  ;;  %s34_s29 = sshll.u32 %s1382_s1, 4  ;;  %s1265_s30 = smov [#allocation6]   ;;  %s35_s29 = int_to_ptr.hbm [resolvable:$true] %s34_s29 }
   0x4   :  { %s36_s9 = sshll.u32 %s1265_s30, 4  ;;  %s62_s12 = sshll.u32 %s1385_s4, 4  ;;  %s37_s9 = int_to_ptr.vmem [resolvable:$true] %s36_s9  ;;  %s63_s12 = int_to_ptr.hbm [resolvable:$true] %s62_s12 }
   0x5   :  { %s1266_s13 = smov 64   ;;  %s1267_s14 = smov 4  }
   0x6   :  { %42 = dma.hbm_to_vmem [thread:$0]  %s35_s29, 1024, %s37_s9, [#allocation7], %s1266_s13, %s1266_s13, %s1267_s14  }
   0x7   :  { %s1268_s15 = smov [#allocation9]   ;;  %s21_s1 = sshll.u32 %s1381_s0, 4  ;;  %s22_s1 = int_to_ptr.hbm [resolvable:$true] %s21_s1 }
   0x8   :  { %s64_s16 = sshll.u32 %s1268_s15, 4  ;;  %s47_s20 = sshll.u32 %s1383_s2, 4  ;;  %s65_s16 = int_to_ptr.vmem [resolvable:$true] %s64_s16  ;;  %s48_s20 = int_to_ptr.hbm [resolvable:$true] %s47_s20 }
   0x9   :  { %70 = dma.hbm_to_vmem [thread:$0]  %s63_s12, 1024, %s65_s16, [#allocation10], %s1266_s13, %s1266_s13, %s1267_s14  }
   0xa   :  { %s1269_s21 = smov [#allocation3]   ;;  %s1270_s23 = smov [#allocation8]  }
   0xb   :  { %s23_s22 = sshll.u32 %s1269_s21, 4  ;;  %s49_s0 = sshll.u32 %s1270_s23, 4  ;;  %s24_s22 = int_to_ptr.vmem [resolvable:$true] %s23_s22  ;;  %s50_s0 = int_to_ptr.vmem [resolvable:$true] %s49_s0 }
   0xc   :  { %29 = dma.hbm_to_vmem [thread:$0]  %s22_s1, 1024, %s24_s22, [#allocation4], %s1266_s13, %s1266_s13, %s1267_s14  }
   0xd   :  { %s77_s26 = sshll.u32 %s1387_s6, 4  ;;  %s1271_s2 = smov [#allocation11]   ;;  %s78_s26 = int_to_ptr.hbm [resolvable:$true] %s77_s26 }
   0xe   :  { %55 = dma.hbm_to_vmem [thread:$0]  %s48_s20, 1024, %s50_s0, [#allocation7], %s1266_s13, %s1266_s13, %s1267_s14  }
   0xf   :  { %s79_s27 = sshll.u32 %s1271_s2, 4  ;;  %s80_s27 = int_to_ptr.vmem [resolvable:$true] %s79_s27 }
  0x10   :  { %85 = dma.hbm_to_vmem [thread:$0]  %s78_s26, 1024, %s80_s27, [#allocation10], %s1266_s13, %s1266_s13, %s1267_s14  }
  0x11   :  { %1257 = dma.done.wait [#allocation4], 1024  }
  0x12   :  { %1258 = vsyncadd [#allocation4], 4294966272 }
  0x13   :  { %1259 = dma.done.wait [#allocation7], 2048  }
  0x14   :  { %1260 = vsyncadd [#allocation7], 4294965248 }
  0x15   :  { %1261 = dma.done.wait [#allocation10], 2048  }
  0x16   :  { %1262 = vsyncadd [#allocation10], 4294965248  ;;  %v1022_v0 = vld [vmem:[#allocation6 + $0x38] sm:$0xff]  ;;  %v1021_v1 = vld [vmem:[#allocation6 + $0x30] sm:$0xff]  ;;  %s838_s12 = sshll.u32 %s1389_s8, 4  ;;  %s839_s12 = int_to_ptr.hbm [resolvable:$true] %s838_s12 }
  0x17   :  { %277 = vmatpush.bf16.msra.mxu0 %v1022_v0  ;;  %v1020_v2 = vld [vmem:[#allocation6 + $0x28] sm:$0xff]  ;;  %v1019_v3 = vld [vmem:[#allocation6 + $0x20] sm:$0xff]  ;;  %v1018_v4 = vld [vmem:[#allocation6 + $0x18] sm:$0xff] }
  0x18   :  { %v1017_v5 = vld [vmem:[#allocation6 + $0x10] sm:$0xff]  ;;  %v1016_v6 = vld [vmem:[#allocation6 + $0x8] sm:$0xff]  ;;  %v1015_v7 = vld [vmem:[#allocation6] sm:$0xff] }
  0x19   :  { %v1023_v8 = vld [vmem:[#allocation3] sm:$0xff]  ;;  %v1024_v9 = vld [vmem:[#allocation3 + $0x8] sm:$0xff]  ;;  %v1025_v10 = vld [vmem:[#allocation3 + $0x10] sm:$0xff] }
  0x1a   :  { %v1026_v11 = vld [vmem:[#allocation3 + $0x18] sm:$0xff]  ;;  %v1027_v12 = vld [vmem:[#allocation3 + $0x20] sm:$0xff]  ;;  %v1037_v14 = vld [vmem:[#allocation8 + $0x30] sm:$0xff] }
  0x1b   :  { %278 = vmatpush.bf16.msra.mxu0 %v1021_v1  ;;  %v1038_v13 = vld [vmem:[#allocation8 + $0x38] sm:$0xff]  ;;  %v1028_v15 = vld [vmem:[#allocation3 + $0x28] sm:$0xff]  ;;  %v1035_v17 = vld [vmem:[#allocation8 + $0x20] sm:$0xff] }
  0x1c   :  { %453 = vmatpush.bf16.msra.mxu1 %v1038_v13  ;;  %v1036_v16 = vld [vmem:[#allocation8 + $0x28] sm:$0xff]  ;;  %v1034_v18 = vld [vmem:[#allocation8 + $0x18] sm:$0xff]  ;;  %v1033_v19 = vld [vmem:[#allocation8 + $0x10] sm:$0xff] }
  0x1d   :  { %v1029_v20 = vld [vmem:[#allocation3 + $0x30] sm:$0xff]  ;;  %v1032_v21 = vld [vmem:[#allocation8 + $0x8] sm:$0xff]  ;;  %v1031_v22 = vld [vmem:[#allocation8] sm:$0xff] }
  0x1e   :  { %v1030_v23 = vld [vmem:[#allocation3 + $0x38] sm:$0xff]  ;;  %v1045_v43 = vld [vmem:[#allocation9 + $0x30] sm:$0xff]  ;;  %v1044_v44 = vld [vmem:[#allocation9 + $0x28] sm:$0xff] }
  0x1f   :  { %279 = vmatpush.bf16.msra.mxu0 %v1020_v2  ;;  %v1046_v40 = vld [vmem:[#allocation9 + $0x38] sm:$0xff]  ;;  %v1043_v46 = vld [vmem:[#allocation9 + $0x20] sm:$0xff]  ;;  %v1041_v50 = vld [vmem:[#allocation9 + $0x10] sm:$0xff] }
  0x20   :  { %454 = vmatpush.bf16.msra.mxu1 %v1037_v14  ;;  %594 = vmatpush.bf16.msra.mxu2 %v1046_v40  ;;  %v1042_v47 = vld [vmem:[#allocation9 + $0x18] sm:$0xff]  ;;  %v1040_v51 = vld [vmem:[#allocation9 + $0x8] sm:$0xff]  ;;  %v1039_v53 = vld [vmem:[#allocation9] sm:$0xff] }
  0x21   :  { %v1351_v57 = vld [vmem:[%s1384_s3] ss:$0 sm:$0xff] }
  0x23   :  { %280 = vmatpush.bf16.msra.mxu0 %v1019_v3 }
  0x24   :  { %455 = vmatpush.bf16.msra.mxu1 %v1036_v16  ;;  %595 = vmatpush.bf16.msra.mxu2 %v1045_v43 }
  0x27   :  { %281 = vmatpush.bf16.msra.mxu0 %v1018_v4 }
  0x28   :  { %456 = vmatpush.bf16.msra.mxu1 %v1035_v17  ;;  %596 = vmatpush.bf16.msra.mxu2 %v1044_v44 }
  0x2b   :  { %282 = vmatpush.bf16.msra.mxu0 %v1017_v5 }
  0x2c   :  { %457 = vmatpush.bf16.msra.mxu1 %v1034_v18  ;;  %597 = vmatpush.bf16.msra.mxu2 %v1043_v46 }
  0x2f   :  { %283 = vmatpush.bf16.msra.mxu0 %v1016_v6 }
  0x30   :  { %458 = vmatpush.bf16.msra.mxu1 %v1033_v19  ;;  %598 = vmatpush.bf16.msra.mxu2 %v1042_v47  ;;  %v1050_v47 = vld [vmem:[#allocation11 + $0x18] sm:$0xff] }
  0x33   :  { %284 = vmatpush.bf16.msra.mxu0 %v1015_v7 }
  0x34   :  { %459 = vmatpush.bf16.msra.mxu1 %v1032_v21  ;;  %599 = vmatpush.bf16.msra.mxu2 %v1041_v50 }
  0x36   :  { %285 = vmatmul.bf16.vlgmr.msra.gmra.mxu0 %v1023_v8 }
  0x38   :  { %460 = vmatpush.bf16.msra.mxu1 %v1031_v22  ;;  %600 = vmatpush.bf16.msra.mxu2 %v1040_v51  ;;  %v1048_v51 = vld [vmem:[#allocation11 + $0x8] sm:$0xff] }
  0x3c   :  { %601 = vmatpush.bf16.msra.mxu2 %v1039_v53 }
  0x46   :  { %290 = vmatmul.bf16.gmra.mxu0 %v1024_v9 }
  0x56   :  { %295 = vmatmul.bf16.gmra.mxu0 %v1025_v10 }
  0x66   :  { %300 = vmatmul.bf16.gmra.mxu0 %v1026_v11 }
  0x76   :  { %305 = vmatmul.bf16.gmra.mxu0 %v1027_v12 }
  0x86   :  { %310 = vmatmul.bf16.gmra.mxu0 %v1028_v15 }
  0x96   :  { %315 = vmatmul.bf16.gmra.mxu0 %v1029_v20 }
  0xa6   :  { %320 = vmatmul.bf16.gmra.mxu0 %v1030_v23 }
  0xb3   :  { %v286_v24 = vpop.f32.mrf.mxu0 }
  0xbb   :  { %v288_v25 = vpop.f32.mrf.mxu0 }
  0xbc   :  { %v377_v26 = vpack.c.bf16 %v288_v25, %v286_v24 }
  0xbe   :  { %461 = vmatmul.bf16.vlgmr.msra.gmra.mxu1 %v377_v26 }
  0xc3   :  { %v291_v27 = vpop.f32.mrf.mxu0 }
  0xcb   :  { %v293_v28 = vpop.f32.mrf.mxu0 }
  0xcc   :  { %v378_v29 = vpack.c.bf16 %v293_v28, %v291_v27 }
  0xce   :  { %466 = vmatmul.bf16.gmra.mxu1 %v378_v29 }
  0xd3   :  { %v296_v30 = vpop.f32.mrf.mxu0 }
  0xdb   :  { %v298_v31 = vpop.f32.mrf.mxu0 }
  0xdc   :  { %v379_v32 = vpack.c.bf16 %v298_v31, %v296_v30 }
  0xde   :  { %471 = vmatmul.bf16.gmra.mxu1 %v379_v32 }
  0xe3   :  { %v301_v33 = vpop.f32.mrf.mxu0 }
  0xeb   :  { %v303_v34 = vpop.f32.mrf.mxu0 }
  0xec   :  { %v380_v35 = vpack.c.bf16 %v303_v34, %v301_v33 }
  0xee   :  { %476 = vmatmul.bf16.gmra.mxu1 %v380_v35  ;;  %v1054_v35 = vld [vmem:[#allocation11 + $0x38] sm:$0xff] }
  0xef   :  { %735 = vmatpush.bf16.msra.mxu3 %v1054_v35 }
  0xf3   :  { %v306_v36 = vpop.f32.mrf.mxu0 }
  0xfb   :  { %v308_v37 = vpop.f32.mrf.mxu0 }
  0xfc   :  { %v381_v38 = vpack.c.bf16 %v308_v37, %v306_v36  ;;  %v1053_v37 = vld [vmem:[#allocation11 + $0x30] sm:$0xff] }
  0xfd   :  { %736 = vmatpush.bf16.msra.mxu3 %v1053_v37 }
  0xfe   :  { %481 = vmatmul.bf16.gmra.mxu1 %v381_v38  ;;  %v1052_v38 = vld [vmem:[#allocation11 + $0x28] sm:$0xff] }
 0x101   :  { %737 = vmatpush.bf16.msra.mxu3 %v1052_v38 }
 0x103   :  { %v311_v39 = vpop.f32.mrf.mxu0 }
 0x10b   :  { %v313_v41 = vpop.f32.mrf.mxu0 }
 0x10c   :  { %v382_v42 = vpack.c.bf16 %v313_v41, %v311_v39 }
 0x10e   :  { %486 = vmatmul.bf16.gmra.mxu1 %v382_v42  ;;  %v1051_v42 = vld [vmem:[#allocation11 + $0x20] sm:$0xff] }
 0x10f   :  { %738 = vmatpush.bf16.msra.mxu3 %v1051_v42 }
 0x113   :  { %v316_v45 = vpop.f32.mrf.mxu0  ;;  %739 = vmatpush.bf16.msra.mxu3 %v1050_v47 }
 0x11b   :  { %v318_v48 = vpop.f32.mrf.mxu0 }
 0x11c   :  { %v383_v49 = vpack.c.bf16 %v318_v48, %v316_v45  ;;  %v1049_v48 = vld [vmem:[#allocation11 + $0x10] sm:$0xff] }
 0x11d   :  { %740 = vmatpush.bf16.msra.mxu3 %v1049_v48 }
 0x11e   :  { %491 = vmatmul.bf16.gmra.mxu1 %v383_v49 }
 0x121   :  { %741 = vmatpush.bf16.msra.mxu3 %v1048_v51  ;;  %v1112_v51 = vld [vmem:[%s1388_s7] ss:$0 sm:$0xff]  ;;  %s1272_s7 = smov [#allocation12]  }
 0x122   :  { %s836_s9 = sshll.u32 %s1272_s7, 4  ;;  %s837_s9 = int_to_ptr.vmem [resolvable:$true] %s836_s9 }
 0x123   :  { %v321_v52 = vpop.f32.mrf.mxu0 }
 0x12b   :  { %v323_v54 = vpop.f32.mrf.mxu0 }
 0x12c   :  { %v384_v55 = vpack.c.bf16 %v323_v54, %v321_v52 }
 0x12e   :  { %496 = vmatmul.bf16.gmra.mxu1 %v384_v55  ;;  %v1047_v55 = vld [vmem:[#allocation11] sm:$0xff] }
 0x12f   :  { %742 = vmatpush.bf16.msra.mxu3 %v1047_v55 }
 0x13b   :  { %v462_v56 = vpop.f32.mrf.mxu1 }
 0x13c   :  { %v463_v58 = vadd.f32 %v1351_v57, %v462_v56 }
 0x13e   :  { %v502_v61 = vmax.f32 %v463_v58, 0.0 }
 0x143   :  { %v464_v59 = vpop.f32.mrf.mxu1 }
 0x144   :  { %v465_v60 = vadd.f32 %v1351_v57, %v464_v59  ;;  %v1111_v59 = vld [vmem:[%s1386_s5] ss:$0 sm:$0xff] }
 0x146   :  { %v503_v62 = vmax.f32 %v465_v60, 0.0 }
 0x148   :  { %v518_v63 = vpack.c.bf16 %v503_v62, %v502_v61 }
 0x14a   :  { %602 = vmatmul.bf16.vlgmr.msra.gmra.mxu2 %v518_v63 }
 0x14b   :  { %v467_v0 = vpop.f32.mrf.mxu1 }
 0x14c   :  { %v468_v1 = vadd.f32 %v1351_v57, %v467_v0 }
 0x14e   :  { %v504_v4 = vmax.f32 %v468_v1, 0.0 }
 0x153   :  { %v469_v2 = vpop.f32.mrf.mxu1 }
 0x154   :  { %v470_v3 = vadd.f32 %v1351_v57, %v469_v2 }
 0x156   :  { %v505_v5 = vmax.f32 %v470_v3, 0.0 }
 0x158   :  { %v519_v6 = vpack.c.bf16 %v505_v5, %v504_v4 }
 0x15a   :  { %607 = vmatmul.bf16.gmra.mxu2 %v519_v6 }
 0x15b   :  { %v472_v7 = vpop.f32.mrf.mxu1 }
 0x15c   :  { %v473_v8 = vadd.f32 %v1351_v57, %v472_v7 }
 0x15e   :  { %v506_v11 = vmax.f32 %v473_v8, 0.0 }
 0x163   :  { %v474_v9 = vpop.f32.mrf.mxu1 }
 0x164   :  { %v475_v10 = vadd.f32 %v1351_v57, %v474_v9 }
 0x166   :  { %v507_v12 = vmax.f32 %v475_v10, 0.0 }
 0x168   :  { %v520_v13 = vpack.c.bf16 %v507_v12, %v506_v11 }
 0x16a   :  { %612 = vmatmul.bf16.gmra.mxu2 %v520_v13 }
 0x16b   :  { %v477_v14 = vpop.f32.mrf.mxu1 }
 0x16c   :  { %v478_v15 = vadd.f32 %v1351_v57, %v477_v14 }
 0x16e   :  { %v508_v18 = vmax.f32 %v478_v15, 0.0 }
 0x173   :  { %v479_v16 = vpop.f32.mrf.mxu1 }
 0x174   :  { %v480_v17 = vadd.f32 %v1351_v57, %v479_v16 }
 0x176   :  { %v509_v19 = vmax.f32 %v480_v17, 0.0 }
 0x178   :  { %v521_v20 = vpack.c.bf16 %v509_v19, %v508_v18 }
 0x17a   :  { %617 = vmatmul.bf16.gmra.mxu2 %v521_v20 }
 0x17b   :  { %v482_v21 = vpop.f32.mrf.mxu1 }
 0x17c   :  { %v483_v22 = vadd.f32 %v1351_v57, %v482_v21 }
 0x17e   :  { %v510_v25 = vmax.f32 %v483_v22, 0.0 }
 0x183   :  { %v484_v23 = vpop.f32.mrf.mxu1 }
 0x184   :  { %v485_v24 = vadd.f32 %v1351_v57, %v484_v23 }
 0x186   :  { %v511_v26 = vmax.f32 %v485_v24, 0.0 }
 0x188   :  { %v522_v27 = vpack.c.bf16 %v511_v26, %v510_v25 }
 0x18a   :  { %622 = vmatmul.bf16.gmra.mxu2 %v522_v27 }
 0x18b   :  { %v487_v28 = vpop.f32.mrf.mxu1 }
 0x18c   :  { %v488_v29 = vadd.f32 %v1351_v57, %v487_v28 }
 0x18e   :  { %v512_v32 = vmax.f32 %v488_v29, 0.0 }
 0x193   :  { %v489_v30 = vpop.f32.mrf.mxu1 }
 0x194   :  { %v490_v31 = vadd.f32 %v1351_v57, %v489_v30 }
 0x196   :  { %v513_v33 = vmax.f32 %v490_v31, 0.0 }
 0x198   :  { %v523_v34 = vpack.c.bf16 %v513_v33, %v512_v32 }
 0x19a   :  { %627 = vmatmul.bf16.gmra.mxu2 %v523_v34 }
 0x19b   :  { %v492_v36 = vpop.f32.mrf.mxu1 }
 0x19c   :  { %v493_v39 = vadd.f32 %v1351_v57, %v492_v36 }
 0x19e   :  { %v514_v43 = vmax.f32 %v493_v39, 0.0 }
 0x1a3   :  { %v494_v40 = vpop.f32.mrf.mxu1 }
 0x1a4   :  { %v495_v41 = vadd.f32 %v1351_v57, %v494_v40 }
 0x1a6   :  { %v515_v44 = vmax.f32 %v495_v41, 0.0 }
 0x1a8   :  { %v524_v45 = vpack.c.bf16 %v515_v44, %v514_v43 }
 0x1aa   :  { %632 = vmatmul.bf16.gmra.mxu2 %v524_v45 }
 0x1ab   :  { %v497_v46 = vpop.f32.mrf.mxu1 }
 0x1ac   :  { %v498_v49 = vadd.f32 %v1351_v57, %v497_v46 }
 0x1ae   :  { %v516_v53 = vmax.f32 %v498_v49, 0.0 }
 0x1b3   :  { %v499_v50 = vpop.f32.mrf.mxu1 }
 0x1b4   :  { %v500_v52 = vadd.f32 %v1351_v57, %v499_v50 }
 0x1b6   :  { %v517_v54 = vmax.f32 %v500_v52, 0.0 }
 0x1b8   :  { %v525_v56 = vpack.c.bf16 %v517_v54, %v516_v53 }
 0x1ba   :  { %637 = vmatmul.bf16.gmra.mxu2 %v525_v56 }
 0x1cd   :  { %v603_v58 = vpop.f32.mrf.mxu2 }
 0x1ce   :  { %v604_v60 = vadd.f32 %v1111_v59, %v603_v58 }
 0x1d0   :  { %v643_v63 = vmax.f32 %v604_v60, 0.0 }
 0x1d5   :  { %v605_v61 = vpop.f32.mrf.mxu2 }
 0x1d6   :  { %v606_v62 = vadd.f32 %v1111_v59, %v605_v61 }
 0x1d8   :  { %v644_v0 = vmax.f32 %v606_v62, 0.0 }
 0x1da   :  { %v659_v1 = vpack.c.bf16 %v644_v0, %v643_v63 }
 0x1dc   :  { %743 = vmatmul.bf16.vlgmr.msra.gmra.mxu3 %v659_v1 }
 0x1dd   :  { %v608_v57 = vpop.f32.mrf.mxu2 }
 0x1de   :  { %v609_v2 = vadd.f32 %v1111_v59, %v608_v57 }
 0x1e0   :  { %v645_v5 = vmax.f32 %v609_v2, 0.0 }
 0x1e5   :  { %v610_v3 = vpop.f32.mrf.mxu2 }
 0x1e6   :  { %v611_v4 = vadd.f32 %v1111_v59, %v610_v3 }
 0x1e8   :  { %v646_v6 = vmax.f32 %v611_v4, 0.0 }
 0x1ea   :  { %v660_v7 = vpack.c.bf16 %v646_v6, %v645_v5 }
 0x1ec   :  { %748 = vmatmul.bf16.gmra.mxu3 %v660_v7 }
 0x1ed   :  { %v613_v8 = vpop.f32.mrf.mxu2 }
 0x1ee   :  { %v614_v9 = vadd.f32 %v1111_v59, %v613_v8 }
 0x1f0   :  { %v647_v12 = vmax.f32 %v614_v9, 0.0 }
 0x1f5   :  { %v615_v10 = vpop.f32.mrf.mxu2 }
 0x1f6   :  { %v616_v11 = vadd.f32 %v1111_v59, %v615_v10 }
 0x1f8   :  { %v648_v13 = vmax.f32 %v616_v11, 0.0 }
 0x1fa   :  { %v661_v14 = vpack.c.bf16 %v648_v13, %v647_v12 }
 0x1fc   :  { %753 = vmatmul.bf16.gmra.mxu3 %v661_v14 }
 0x1fd   :  { %v618_v15 = vpop.f32.mrf.mxu2 }
 0x1fe   :  { %v619_v16 = vadd.f32 %v1111_v59, %v618_v15 }
 0x200   :  { %v649_v19 = vmax.f32 %v619_v16, 0.0 }
 0x205   :  { %v620_v17 = vpop.f32.mrf.mxu2 }
 0x206   :  { %v621_v18 = vadd.f32 %v1111_v59, %v620_v17 }
 0x208   :  { %v650_v20 = vmax.f32 %v621_v18, 0.0 }
 0x20a   :  { %v662_v21 = vpack.c.bf16 %v650_v20, %v649_v19 }
 0x20c   :  { %758 = vmatmul.bf16.gmra.mxu3 %v662_v21 }
 0x20d   :  { %v623_v22 = vpop.f32.mrf.mxu2 }
 0x20e   :  { %v624_v23 = vadd.f32 %v1111_v59, %v623_v22 }
 0x210   :  { %v651_v26 = vmax.f32 %v624_v23, 0.0 }
 0x215   :  { %v625_v24 = vpop.f32.mrf.mxu2 }
 0x216   :  { %v626_v25 = vadd.f32 %v1111_v59, %v625_v24 }
 0x218   :  { %v652_v27 = vmax.f32 %v626_v25, 0.0 }
 0x21a   :  { %v663_v28 = vpack.c.bf16 %v652_v27, %v651_v26 }
 0x21c   :  { %763 = vmatmul.bf16.gmra.mxu3 %v663_v28 }
 0x21d   :  { %v628_v29 = vpop.f32.mrf.mxu2 }
 0x21e   :  { %v629_v30 = vadd.f32 %v1111_v59, %v628_v29 }
 0x220   :  { %v653_v33 = vmax.f32 %v629_v30, 0.0 }
 0x225   :  { %v630_v31 = vpop.f32.mrf.mxu2 }
 0x226   :  { %v631_v32 = vadd.f32 %v1111_v59, %v630_v31 }
 0x228   :  { %v654_v34 = vmax.f32 %v631_v32, 0.0 }
 0x22a   :  { %v664_v35 = vpack.c.bf16 %v654_v34, %v653_v33 }
 0x22c   :  { %768 = vmatmul.bf16.gmra.mxu3 %v664_v35 }
 0x22d   :  { %v633_v36 = vpop.f32.mrf.mxu2 }
 0x22e   :  { %v634_v37 = vadd.f32 %v1111_v59, %v633_v36 }
 0x230   :  { %v655_v40 = vmax.f32 %v634_v37, 0.0 }
 0x235   :  { %v635_v38 = vpop.f32.mrf.mxu2 }
 0x236   :  { %v636_v39 = vadd.f32 %v1111_v59, %v635_v38 }
 0x238   :  { %v656_v41 = vmax.f32 %v636_v39, 0.0 }
 0x23a   :  { %v665_v42 = vpack.c.bf16 %v656_v41, %v655_v40 }
 0x23c   :  { %773 = vmatmul.bf16.gmra.mxu3 %v665_v42 }
 0x23d   :  { %v638_v43 = vpop.f32.mrf.mxu2 }
 0x23e   :  { %v639_v44 = vadd.f32 %v1111_v59, %v638_v43 }
 0x240   :  { %v657_v47 = vmax.f32 %v639_v44, 0.0 }
 0x245   :  { %v640_v45 = vpop.f32.mrf.mxu2 }
 0x246   :  { %v641_v46 = vadd.f32 %v1111_v59, %v640_v45 }
 0x248   :  { %v658_v48 = vmax.f32 %v641_v46, 0.0 }
 0x24a   :  { %v666_v49 = vpack.c.bf16 %v658_v48, %v657_v47 }
 0x24c   :  { %778 = vmatmul.bf16.gmra.mxu3 %v666_v49 }
 0x25f   :  { %v744_v50 = vpop.f32.mrf.mxu3 }
 0x260   :  { %v745_v52 = vadd.f32 %v1112_v51, %v744_v50 }
 0x262   :  { %v784_v55 = vmax.f32 %v745_v52, 0.0 }
 0x267   :  { %v746_v53 = vpop.f32.mrf.mxu3 }
 0x268   :  { %v747_v54 = vadd.f32 %v1112_v51, %v746_v53 }
 0x26a   :  { %v785_v56 = vmax.f32 %v747_v54, 0.0 }
 0x26c   :  { %v1058_v58 = vpack.c.bf16 %v785_v56, %v784_v55 }
 0x26e   :  { %1059 = vst [vmem:[#allocation12] sm:$0xff] %v1058_v58  }
 0x26f   :  { %v749_v60 = vpop.f32.mrf.mxu3 }
 0x270   :  { %v750_v61 = vadd.f32 %v1112_v51, %v749_v60 }
 0x272   :  { %v786_v63 = vmax.f32 %v750_v61, 0.0 }
 0x277   :  { %v751_v62 = vpop.f32.mrf.mxu3 }
 0x278   :  { %v752_v59 = vadd.f32 %v1112_v51, %v751_v62 }
 0x27a   :  { %v787_v0 = vmax.f32 %v752_v59, 0.0 }
 0x27c   :  { %v1063_v1 = vpack.c.bf16 %v787_v0, %v786_v63 }
 0x27e   :  { %1095 = vst [vmem:[#allocation12 + $0x8] sm:$0xff] %v1063_v1  }
 0x27f   :  { %v754_v57 = vpop.f32.mrf.mxu3 }
 0x280   :  { %v755_v2 = vadd.f32 %v1112_v51, %v754_v57 }
 0x282   :  { %v788_v5 = vmax.f32 %v755_v2, 0.0 }
 0x287   :  { %v756_v3 = vpop.f32.mrf.mxu3 }
 0x288   :  { %v757_v4 = vadd.f32 %v1112_v51, %v756_v3 }
 0x28a   :  { %v789_v6 = vmax.f32 %v757_v4, 0.0 }
 0x28c   :  { %v1068_v7 = vpack.c.bf16 %v789_v6, %v788_v5 }
 0x28e   :  { %1096 = vst [vmem:[#allocation12 + $0x10] sm:$0xff] %v1068_v7  }
 0x28f   :  { %v759_v8 = vpop.f32.mrf.mxu3 }
 0x290   :  { %v760_v9 = vadd.f32 %v1112_v51, %v759_v8 }
 0x292   :  { %v790_v12 = vmax.f32 %v760_v9, 0.0 }
 0x297   :  { %v761_v10 = vpop.f32.mrf.mxu3 }
 0x298   :  { %v762_v11 = vadd.f32 %v1112_v51, %v761_v10 }
 0x29a   :  { %v791_v13 = vmax.f32 %v762_v11, 0.0 }
 0x29c   :  { %v1073_v14 = vpack.c.bf16 %v791_v13, %v790_v12 }
 0x29e   :  { %1097 = vst [vmem:[#allocation12 + $0x18] sm:$0xff] %v1073_v14  }
 0x29f   :  { %v764_v15 = vpop.f32.mrf.mxu3 }
 0x2a0   :  { %v765_v16 = vadd.f32 %v1112_v51, %v764_v15 }
 0x2a2   :  { %v792_v19 = vmax.f32 %v765_v16, 0.0 }
 0x2a7   :  { %v766_v17 = vpop.f32.mrf.mxu3 }
 0x2a8   :  { %v767_v18 = vadd.f32 %v1112_v51, %v766_v17 }
 0x2aa   :  { %v793_v20 = vmax.f32 %v767_v18, 0.0 }
 0x2ac   :  { %v1078_v21 = vpack.c.bf16 %v793_v20, %v792_v19 }
 0x2ae   :  { %1098 = vst [vmem:[#allocation12 + $0x20] sm:$0xff] %v1078_v21  }
 0x2af   :  { %v769_v22 = vpop.f32.mrf.mxu3 }
 0x2b0   :  { %v770_v23 = vadd.f32 %v1112_v51, %v769_v22 }
 0x2b2   :  { %v794_v26 = vmax.f32 %v770_v23, 0.0 }
 0x2b7   :  { %v771_v24 = vpop.f32.mrf.mxu3 }
 0x2b8   :  { %v772_v25 = vadd.f32 %v1112_v51, %v771_v24 }
 0x2ba   :  { %v795_v27 = vmax.f32 %v772_v25, 0.0 }
 0x2bc   :  { %v1083_v28 = vpack.c.bf16 %v795_v27, %v794_v26 }
 0x2be   :  { %1099 = vst [vmem:[#allocation12 + $0x28] sm:$0xff] %v1083_v28  }
 0x2bf   :  { %v774_v29 = vpop.f32.mrf.mxu3 }
 0x2c0   :  { %v775_v30 = vadd.f32 %v1112_v51, %v774_v29 }
 0x2c2   :  { %v796_v33 = vmax.f32 %v775_v30, 0.0 }
 0x2c7   :  { %v776_v31 = vpop.f32.mrf.mxu3 }
 0x2c8   :  { %v777_v32 = vadd.f32 %v1112_v51, %v776_v31 }
 0x2ca   :  { %v797_v34 = vmax.f32 %v777_v32, 0.0 }
 0x2cc   :  { %v1088_v35 = vpack.c.bf16 %v797_v34, %v796_v33 }
 0x2ce   :  { %1100 = vst [vmem:[#allocation12 + $0x30] sm:$0xff] %v1088_v35  }
 0x2cf   :  { %v779_v36 = vpop.f32.mrf.mxu3 }
 0x2d0   :  { %v780_v37 = vadd.f32 %v1112_v51, %v779_v36 }
 0x2d2   :  { %v798_v40 = vmax.f32 %v780_v37, 0.0 }
 0x2d7   :  { %v781_v38 = vpop.f32.mrf.mxu3 }
 0x2d8   :  { %v782_v39 = vadd.f32 %v1112_v51, %v781_v38 }
 0x2da   :  { %v799_v41 = vmax.f32 %v782_v39, 0.0 }
 0x2dc   :  { %v1093_v42 = vpack.c.bf16 %v799_v41, %v798_v40 }
 0x2de   :  { %1101 = vst [vmem:[#allocation12 + $0x38] sm:$0xff] %v1093_v42  }
 0x2df   :  { %844 = dma.vmem_to_hbm [thread:$0]  %s837_s9, 1024, %s839_s12, [#allocation5], %s1266_s13, %s1266_s13, %s1267_s14  }
 0x2e0   :  { %1263 = dma.done.wait [#allocation5], 1024  }
 0x2e1   :  { %1264 = vsyncadd [#allocation5], 4294966272 }
 0x2e2   :  { %849 = vsyncpa [#allocation4], 1 }
 0x2e3   :  { %850 = vsyncpa [#allocation7], 1 }
 0x2e4   :  { %851 = vsyncpa [#allocation10], 1 }
 0x2e5   :  { %852 = vsyncpa [#allocation5], 1 }

</bundles_post_ra>
